<compile_context>
chip_gen: v6e
topology: v6e:2x2x1
jax: 0.10.0
libtpu: 0.0.40
codegen_flags: <defaults>
</compile_context>

<pallas_src>
import jax
import jax.numpy as jnp
from jax.experimental import pallas as pl
from jax.experimental.pallas import tpu as pltpu


def _make_kernel(batch, num_categories, num_atoms, tb):
    c, a = num_categories, num_atoms
    # Global-count scalings, hoisted out of the loop (finalize-only).
    inv_n_bce = 1.0 / float(batch * c)
    inv_n_mse = 1.0 / float(batch * a)

    def kernel(pi_ref, pc_ref, tgt_ref, out_ref, bce_acc, mse_acc):
        i = pl.program_id(0)

        @pl.when(i == 0)
        def _init():
            bce_acc[...] = jnp.zeros_like(bce_acc)
            mse_acc[...] = jnp.zeros_like(mse_acc)

        x = pi_ref[...].astype(jnp.float32)    # (tb, c)   logits
        pc = pc_ref[...].astype(jnp.float32)   # (tb, a)   predicted coeffs
        t = tgt_ref[...].astype(jnp.float32)   # (tb, c+a) concatenated targets
        y = t[:, :c]                           # true indices  (static slice)
        tc = t[:, c:]                          # true coeffs   (static slice)

        # Mask rows that fall past the real batch (ragged last tile).
        row = i * tb + jax.lax.broadcasted_iota(jnp.int32, (tb, 1), 0)
        valid = row < batch                    # (tb, 1) bool

        # Numerically-stable BCE with logits (matches torch.nn.BCEWithLogitsLoss):
        #   l = max(x, 0) - x*y + log(1 + exp(-|x|))
        bce = jnp.maximum(x, 0.0) - x * y + jnp.log1p(jnp.exp(-jnp.abs(x)))
        d = pc - tc

        # Pure vector (VPU) accumulation; cross-lane reduce deferred to finalize.
        bce_acc[...] += jnp.where(valid, bce, 0.0)
        mse_acc[...] += jnp.where(valid, d * d, 0.0)

        @pl.when(i == pl.num_programs(0) - 1)
        def _finalize():
            indices_loss = jnp.sum(bce_acc[...]) * inv_n_bce
            coefficients_loss = jnp.sum(mse_acc[...]) * inv_n_mse
            out_ref[0, 0] = indices_loss + coefficients_loss

    return kernel


def multi_class_coefficient_loss(predicted_indices, predicted_coefficients,
                                 targets, *, num_atoms, num_categories,
                                 block_rows=1024):
    b, c = predicted_indices.shape
    a = predicted_coefficients.shape[1]
    assert c == num_categories and a == num_atoms
    assert targets.shape == (b, c + a)
    assert block_rows % 8 == 0

    # Biggest batch tile that makes sense (sublane-aligned or full extent).
    tb = b if b <= block_rows else block_rows
    grid = (pl.cdiv(b, tb),)

    kernel = _make_kernel(b, c, a, tb)

    bytes_in = (predicted_indices.size * predicted_indices.dtype.itemsize
                + predicted_coefficients.size * predicted_coefficients.dtype.itemsize
                + targets.size * targets.dtype.itemsize)
    cost = pl.CostEstimate(flops=8 * b * c + 3 * b * a,
                           transcendentals=2 * b * c,
                           bytes_accessed=bytes_in + 4)

    out = pl.pallas_call(
        kernel,
        out_shape=jax.ShapeDtypeStruct((1, 1), jnp.float32),
        grid=grid,
        in_specs=[
            pl.BlockSpec((tb, c), lambda i: (i, 0)),        # predicted_indices
            pl.BlockSpec((tb, a), lambda i: (i, 0)),        # predicted_coefficients
            pl.BlockSpec((tb, c + a), lambda i: (i, 0)),    # targets (whole rows)
        ],
        out_specs=pl.BlockSpec((1, 1), lambda i: (0, 0),
                               memory_space=pltpu.MemorySpace.SMEM),
        scratch_shapes=[
            pltpu.VMEM((tb, c), jnp.float32),   # BCE partial-sum accumulator
            pltpu.VMEM((tb, a), jnp.float32),   # MSE partial-sum accumulator
        ],
        compiler_params=pltpu.CompilerParams(
            dimension_semantics=("arbitrary",)),   # reduction axis
        cost_estimate=cost,
    )(predicted_indices, predicted_coefficients, targets)
    return out[0, 0]


def _reference(predicted_indices, predicted_coefficients, targets,
               *, num_atoms, num_categories):
    ti = targets[:, :num_categories].astype(jnp.float32)
    tc = targets[:, num_categories:].astype(jnp.float32)
    x = predicted_indices.astype(jnp.float32)
    bce = jnp.mean(jnp.maximum(x, 0.0) - x * ti + jnp.log1p(jnp.exp(-jnp.abs(x))))
    mse = jnp.mean((predicted_coefficients.astype(jnp.float32) - tc) ** 2)
    return bce + mse


def _make_inputs(key, batch, num_categories, num_atoms, dtype=jnp.float32):
    k1, k2, k3, k4 = jax.random.split(key, 4)
    pi = jax.random.normal(k1, (batch, num_categories), jnp.float32).astype(dtype)
    pc = jax.random.normal(k2, (batch, num_atoms), jnp.float32).astype(dtype)
    ti = jax.random.bernoulli(k3, 0.3, (batch, num_categories)).astype(jnp.float32)
    tc = jax.random.normal(k4, (batch, num_atoms), jnp.float32)
    tgt = jnp.concatenate([ti, tc], axis=1).astype(dtype)
    return pi, pc, tgt


if __name__ == "__main__":
    num_categories = 16
    num_atoms = 32
    key = jax.random.PRNGKey(0)

    # Case 1: batch divides the tile (grid of 2).
    pi, pc, tgt = _make_inputs(key, 64, num_categories, num_atoms)
    loss = multi_class_coefficient_loss(
        pi, pc, tgt, num_atoms=num_atoms, num_categories=num_categories,
        block_rows=32)
    loss = jax.block_until_ready(loss)
    ref = _reference(pi, pc, tgt, num_atoms=num_atoms,
                     num_categories=num_categories)
    assert jnp.allclose(loss, ref, rtol=1e-5, atol=1e-5), (loss, ref)

    # Case 2: ragged batch (grid of 3, last tile masked).
    pi, pc, tgt = _make_inputs(jax.random.PRNGKey(1), 40,
                               num_categories, num_atoms)
    loss = multi_class_coefficient_loss(
        pi, pc, tgt, num_atoms=num_atoms, num_categories=num_categories,
        block_rows=16)
    loss = jax.block_until_ready(loss)
    ref = _reference(pi, pc, tgt, num_atoms=num_atoms,
                     num_categories=num_categories)
    assert jnp.allclose(loss, ref, rtol=1e-5, atol=1e-5), (loss, ref)

    # Case 3: bf16 predictions/targets fed directly (cast happens in-kernel).
    pi, pc, tgt = _make_inputs(jax.random.PRNGKey(2), 64,
                               num_categories, num_atoms, dtype=jnp.bfloat16)
    loss = multi_class_coefficient_loss(
        pi, pc, tgt, num_atoms=num_atoms, num_categories=num_categories,
        block_rows=32)
    loss = jax.block_until_ready(loss)
    ref = _reference(pi, pc, tgt, num_atoms=num_atoms,
                     num_categories=num_categories)
    assert jnp.allclose(loss, ref, rtol=1e-4, atol=1e-4), (loss, ref)

    print("KERNEL_OK")
</pallas_src>

<mosaic_0001>
module attributes {stable_mosaic.version = 11 : i64} {
  func.func @kernel(%arg0: i32, %arg1: memref<32x16xf32, #tpu.memory_space<vmem>>, %arg2: memref<32x32xf32, #tpu.memory_space<vmem>>, %arg3: memref<32x48xf32, #tpu.memory_space<vmem>>, %arg4: memref<1x1xf32, #tpu.memory_space<smem>>, %arg5: memref<32x16xf32, #tpu.memory_space<vmem>>, %arg6: memref<32x32xf32, #tpu.memory_space<vmem>>) attributes {dimension_semantics = [#tpu.dimension_semantics<arbitrary>], iteration_bounds = array<i64: 2>, scalar_prefetch = 0 : i64, scratch_operands = 2 : i64, tpu.core_type = #tpu.core_type<tc>, window_params = [{transform_indices = @transform_0, window_bounds = array<i64: 32, 16>}, {transform_indices = @transform_1, window_bounds = array<i64: 32, 32>}, {transform_indices = @transform_2, window_bounds = array<i64: 32, 48>}, {transform_indices = @transform_3, window_bounds = array<i64: 1, 1>}]} {
    %c0_i32 = arith.constant 0 : i32
    %0 = arith.cmpi eq, %arg0, %c0_i32 : i32
    %1 = arith.extui %0 : i1 to i32
    %c0_i32_0 = arith.constant 0 : i32
    %2 = arith.cmpi ne, %1, %c0_i32_0 : i32
    scf.if %2 {
      %cst_18 = arith.constant 0.000000e+00 : f32
      %43 = vector.broadcast %cst_18 : f32 to vector<32x16xf32>
      %c0_19 = arith.constant 0 : index
      %c0_20 = arith.constant 0 : index
      %44 = vector.load %arg5[%c0_19, %c0_20] : memref<32x16xf32, #tpu.memory_space<vmem>>, vector<32x16xf32>
      tpu.vector_store %arg5[%c0_19, %c0_20], %43 {strides = array<i32>} : memref<32x16xf32, #tpu.memory_space<vmem>>, vector<32x16xf32>,
      %cst_21 = arith.constant 0.000000e+00 : f32
      %45 = vector.broadcast %cst_21 : f32 to vector<32x32xf32>
      %c0_22 = arith.constant 0 : index
      %c0_23 = arith.constant 0 : index
      %46 = vector.load %arg6[%c0_22, %c0_23] : memref<32x32xf32, #tpu.memory_space<vmem>>, vector<32x32xf32>
      tpu.vector_store %arg6[%c0_22, %c0_23], %45 {strides = array<i32>} : memref<32x32xf32, #tpu.memory_space<vmem>>, vector<32x32xf32>,
    } else {
    }
    %c0 = arith.constant 0 : index
    %c0_1 = arith.constant 0 : index
    %3 = vector.load %arg1[%c0, %c0_1] : memref<32x16xf32, #tpu.memory_space<vmem>>, vector<32x16xf32>
    %c0_2 = arith.constant 0 : index
    %c0_3 = arith.constant 0 : index
    %4 = vector.load %arg2[%c0_2, %c0_3] : memref<32x32xf32, #tpu.memory_space<vmem>>, vector<32x32xf32>
    %c0_4 = arith.constant 0 : index
    %c0_5 = arith.constant 0 : index
    %5 = vector.load %arg3[%c0_4, %c0_5] : memref<32x48xf32, #tpu.memory_space<vmem>>, vector<32x48xf32>
    %6 = vector.extract_strided_slice %5 {offsets = [0, 0], sizes = [32, 16], strides = [1, 1]} : vector<32x48xf32> to vector<32x16xf32>
    %7 = vector.extract_strided_slice %5 {offsets = [0, 16], sizes = [32, 32], strides = [1, 1]} : vector<32x48xf32> to vector<32x32xf32>
    %c32_i32 = arith.constant 32 : i32
    %8 = arith.muli %arg0, %c32_i32 : i32
    %9 = tpu.iota {dimensions = array<i32: 0>} : vector<32x1xi32>
    %10 = vector.broadcast %8 : i32 to vector<32x1xi32>
    %11 = arith.addi %10, %9 : vector<32x1xi32>
    %c64_i32 = arith.constant 64 : i32
    %12 = vector.broadcast %c64_i32 : i32 to vector<32x1xi32>
    %13 = arith.cmpi slt, %11, %12 : vector<32x1xi32>
    %cst = arith.constant 0.000000e+00 : f32
    %14 = vector.broadcast %cst : f32 to vector<32x16xf32>
    %15 = arith.maximumf %3, %14 : vector<32x16xf32>
    %16 = arith.mulf %3, %6 : vector<32x16xf32>
    %17 = arith.subf %15, %16 : vector<32x16xf32>
    %18 = math.absf %3 : vector<32x16xf32>
    %cst_6 = arith.constant 0.000000e+00 : f32
    %19 = vector.broadcast %cst_6 : f32 to vector<32x16xf32>
    %20 = arith.subf %19, %18 : vector<32x16xf32>
    %21 = math.exp %20 : vector<32x16xf32>
    %22 = math.log1p %21 : vector<32x16xf32>
    %23 = arith.addf %17, %22 : vector<32x16xf32>
    %24 = arith.subf %4, %7 : vector<32x32xf32>
    %c0_7 = arith.constant 0 : index
    %c0_8 = arith.constant 0 : index
    %25 = vector.load %arg5[%c0_7, %c0_8] : memref<32x16xf32, #tpu.memory_space<vmem>>, vector<32x16xf32>
    %cst_9 = arith.constant 0.000000e+00 : f32
    %26 = vector.shape_cast %13 : vector<32x1xi1> to vector<32x1xi1>
    %27 = vector.broadcast %26 : vector<32x1xi1> to vector<32x16xi1>
    %28 = vector.broadcast %cst_9 : f32 to vector<32x16xf32>
    %29 = arith.select %27, %23, %28 : vector<32x16xi1>, vector<32x16xf32>
    %30 = arith.addf %25, %29 : vector<32x16xf32>
    %c0_10 = arith.constant 0 : index
    %c0_11 = arith.constant 0 : index
    %31 = vector.load %arg5[%c0_10, %c0_11] : memref<32x16xf32, #tpu.memory_space<vmem>>, vector<32x16xf32>
    tpu.vector_store %arg5[%c0_10, %c0_11], %30 {strides = array<i32>} : memref<32x16xf32, #tpu.memory_space<vmem>>, vector<32x16xf32>,
    %c0_12 = arith.constant 0 : index
    %c0_13 = arith.constant 0 : index
    %32 = vector.load %arg6[%c0_12, %c0_13] : memref<32x32xf32, #tpu.memory_space<vmem>>, vector<32x32xf32>
    %33 = arith.mulf %24, %24 : vector<32x32xf32>
    %cst_14 = arith.constant 0.000000e+00 : f32
    %34 = vector.shape_cast %13 : vector<32x1xi1> to vector<32x1xi1>
    %35 = vector.broadcast %34 : vector<32x1xi1> to vector<32x32xi1>
    %36 = vector.broadcast %cst_14 : f32 to vector<32x32xf32>
    %37 = arith.select %35, %33, %36 : vector<32x32xi1>, vector<32x32xf32>
    %38 = arith.addf %32, %37 : vector<32x32xf32>
    %c0_15 = arith.constant 0 : index
    %c0_16 = arith.constant 0 : index
    %39 = vector.load %arg6[%c0_15, %c0_16] : memref<32x32xf32, #tpu.memory_space<vmem>>, vector<32x32xf32>
    tpu.vector_store %arg6[%c0_15, %c0_16], %38 {strides = array<i32>} : memref<32x32xf32, #tpu.memory_space<vmem>>, vector<32x32xf32>,
    %c1_i32 = arith.constant 1 : i32
    %40 = arith.cmpi eq, %arg0, %c1_i32 : i32
    %41 = arith.extui %40 : i1 to i32
    %c0_i32_17 = arith.constant 0 : i32
    %42 = arith.cmpi ne, %41, %c0_i32_17 : i32
    scf.if %42 {
      %c0_18 = arith.constant 0 : index
      %c0_19 = arith.constant 0 : index
      %43 = vector.load %arg5[%c0_18, %c0_19] : memref<32x16xf32, #tpu.memory_space<vmem>>, vector<32x16xf32>
      %44 = vector.shape_cast %43 : vector<32x16xf32> to vector<1x32x16xf32>
      %cst_20 = arith.constant dense<0.000000e+00> : vector<1xf32>
      %45 = vector.multi_reduction <add>, %44, %cst_20 [1, 2] : vector<1x32x16xf32> to vector<1xf32>
      %46 = vector.shape_cast %45 : vector<1xf32> to vector<1x1x1xf32>
      %47 = vector.extract %46[0, 0, 0] : f32 from vector<1x1x1xf32>
      %cst_21 = arith.constant 9.765625E-4 : f32
      %48 = arith.mulf %47, %cst_21 : f32
      %c0_22 = arith.constant 0 : index
      %c0_23 = arith.constant 0 : index
      %49 = vector.load %arg6[%c0_22, %c0_23] : memref<32x32xf32, #tpu.memory_space<vmem>>, vector<32x32xf32>
      %50 = vector.shape_cast %49 : vector<32x32xf32> to vector<1x32x32xf32>
      %cst_24 = arith.constant dense<0.000000e+00> : vector<1xf32>
      %51 = vector.multi_reduction <add>, %50, %cst_24 [1, 2] : vector<1x32x32xf32> to vector<1xf32>
      %52 = vector.shape_cast %51 : vector<1xf32> to vector<1x1x1xf32>
      %53 = vector.extract %52[0, 0, 0] : f32 from vector<1x1x1xf32>
      %cst_25 = arith.constant 4.8828125E-4 : f32
      %54 = arith.mulf %53, %cst_25 : f32
      %55 = arith.addf %48, %54 : f32
      %c0_26 = arith.constant 0 : index
      %c0_27 = arith.constant 0 : index
      %56 = memref.load %arg4[%c0_26, %c0_27] : memref<1x1xf32, #tpu.memory_space<smem>>
      memref.store %55, %arg4[%c0_26, %c0_27] : memref<1x1xf32, #tpu.memory_space<smem>>
    } else {
    }
    return
  }
  func.func @transform_0(%arg0: i32) -> (i32, i32) {
    %c0_i32 = arith.constant 0 : i32
    %c0_i32_0 = arith.constant 0 : i32
    return %arg0, %c0_i32 : i32, i32
  }
  func.func @transform_1(%arg0: i32) -> (i32, i32) {
    %c0_i32 = arith.constant 0 : i32
    %c0_i32_0 = arith.constant 0 : i32
    return %arg0, %c0_i32 : i32, i32
  }
  func.func @transform_2(%arg0: i32) -> (i32, i32) {
    %c0_i32 = arith.constant 0 : i32
    %c0_i32_0 = arith.constant 0 : i32
    return %arg0, %c0_i32 : i32, i32
  }
  func.func @transform_3(%arg0: i32) -> (i32, i32) {
    %c0_i32 = arith.constant 0 : i32
    %c0_i32_0 = arith.constant 0 : i32
    %c0_i32_1 = arith.constant 0 : i32
    return %c0_i32, %c0_i32_0 : i32, i32
  }
}

</mosaic_0001>

<bundles_post_ra>
// kernel: tpu_custom_call.1
= control target key start
LH: loop header
LB: loop body
LE: loop exit
PB: predicated region body
PF: predicated region fallthrough
CT: control target
= control target key end

     0   :  { %8 = vsyncpa [#allocation5], 0  ;;  %s595_s12 = smov 0   ;;  %s699_s0 = inlined_call_operand.vmem [shape: f32[64,16], index: 0, kind: input, shape index: {}]   ;;  %s700_s1 = inlined_call_operand.vmem [shape: f32[64,32], index: 1, kind: input, shape index: {}]   ;;  %s701_s2 = inlined_call_operand.vmem [shape: f32[64,48], index: 2, kind: input, shape index: {}]   ;;  %s702_s3 = inlined_call_operand.hbm [shape: f32[1,1], index: 3, kind: output, shape index: {}]  }
   0x1 LB: > { %s601_s13 = sadd.s32 4294967295, %s570_s12   ;;  %p499_p0 = scmp.ge.s32.totalorder %s570_s12, 1  ;;  %s570_s12 = sphi %s595_s12, %s14_s12  }
   0x2   : > { %p156_p1 = scmp.lt.s32.totalorder %s570_s12, 3 }
   0x4   : > { %p157_p2 = pnand %p499_p0, %p156_p1 }
   0x5   : > { %s500_s14 = sshll.u32 (!%p157_p2), %s601_s13, 2  ;;  %p506_p4 = scmp.ne.s32.totalorder (!%p157_p2), %s601_s13, 0 }
   0x6   : > { %160 = sbr.rel (%p157_p2) target bundleno = 374 (0x176), region = 32  ;;  %p186_p3 = scmp.lt.s32.totalorder (!%p157_p2), %s500_s14, 7 }
   0xb   : > { %s712_s14 = smov (!%p186_p3, %s500_s14), 7  ;;  %206 = sbr.rel (%p506_p4) target bundleno = 21 (0x15), region = 36 }
   0xc   : > { %s501_s15 = sshll.u32 %s712_s14, 3 }
   0xd   : > { %s189_s18 = scalar_lea.vmem %s699_s0, %s501_s15  ;;  %s612_s21 = scalar_lea.vmem %s700_s1, %s501_s15 }
   0xe   : > { %s201_s24 = scalar_lea.vmem %s701_s2, %s501_s15 }
  0x10   : > { %vm207_vm0 = vcmask 130048   ;;  %vm212_vm1 = vcmask 261120   ;;  %v572_v0 = vmov 0.0  }
  0x11   : > { %208 = vst.msk [vmem:[#allocation2] sm:$0xff] %vm207_vm0, %v572_v0  ;;  %209 = vst.msk [vmem:[#allocation2 + $0x8] sm:$0xff] %vm207_vm0, %v572_v0 }
  0x12   : > { %210 = vst.msk [vmem:[#allocation2 + $0x10] sm:$0xff] %vm207_vm0, %v572_v0  ;;  %211 = vst.msk [vmem:[#allocation2 + $0x18] sm:$0xff] %vm207_vm0, %v572_v0 }
  0x13   : > { %213 = vst.msk [vmem:[#allocation3] sm:$0xff] %vm212_vm1, %v572_v0  ;;  %214 = vst.msk [vmem:[#allocation3 + $0x8] sm:$0xff] %vm212_vm1, %v572_v0 }
  0x14   : > { %215 = vst.msk [vmem:[#allocation3 + $0x10] sm:$0xff] %vm212_vm1, %v572_v0  ;;  %216 = vst.msk [vmem:[#allocation3 + $0x18] sm:$0xff] %vm212_vm1, %v572_v0 }
  0x15 PF: > { %v227_v1 = vld [vmem:[%s201_s24 + $0x10] sm:$0xff]  ;;  %v225_v3 = vld [vmem:[%s201_s24] sm:$0xff]  ;;  %s573_s25 = smov 112   ;;  %v228_v6 = vld [vmem:[%s201_s24 + $0x18] sm:$0xff]  ;;  %v230_v29 = vlaneseq  ;;  %s507_s26 = sshll.u32 %s601_s13, 5  ;;  %vm352_vm2 = vcmask 130048  }
  0x16   : > { %v219_v2 = vld [vmem:[%s189_s18 + $0x10] sm:$0xff]  ;;  %320 = vrot.lane.b32.xlu1 %v227_v1, %s573_s25  ;;  %316 = vrot.lane.b32.xlu0 %v225_v3, %s573_s25  ;;  %v217_v5 = vld [vmem:[%s189_s18] sm:$0xff]  ;;  %vm373_vm11 = vcmask 261120   ;;  %p508_p5 = scmp.ne.s32.totalorder %s601_s13, 1 }
  0x17   : > { %v258_v4 = vand.u32 2147483647, %v219_v2  ;;  %v256_v7 = vand.u32 2147483647, %v217_v5  ;;  %v618_v8 = vld [vmem:[%s189_s18 + $0x18] sm:$0xff]  ;;  %v226_v9 = vld [vmem:[%s201_s24 + $0x8] sm:$0xff]  ;;  %v250_v33 = vmul.f32 %v227_v1, %v219_v2  ;;  %v248_v35 = vmul.f32 %v225_v3, %v217_v5 }
  0x18   : > { %v620_v10 = vld [vmem:[%s189_s18 + $0x8] sm:$0xff]  ;;  %v259_v13 = vand.u32 2147483647, %v618_v8  ;;  %v246_v31 = vmax.f32 %v219_v2, 0.0  ;;  %v244_v34 = vmax.f32 %v217_v5, 0.0  ;;  %v231_v36 = vshrl.u32 %v230_v29, 7 }
  0x19   : > { %v262_v11 = vsub.f32 0.0, %v258_v4  ;;  %v260_v12 = vsub.f32 0.0, %v256_v7  ;;  %v257_v15 = vand.u32 2147483647, %v620_v10  ;;  %v235_v40 = vstv %s507_s26 }
  0x1a   : > { %322 = vrot.lane.b32.xlu1 %v228_v6, %s573_s25  ;;  %318 = vrot.lane.b32.xlu0 %v226_v9, %s573_s25  ;;  %v263_v17 = vsub.f32 0.0, %v259_v13  ;;  %v247_v43 = vmax.f32 %v618_v8, 0.0  ;;  %v251_v44 = vmul.f32 %v228_v6, %v618_v8  ;;  %v254_v45 = vsub.f32 %v246_v31, %v250_v33 }
  0x1b   : > { %v268_v14 = vmul.f32 1.442695, %v262_v11  ;;  %v264_v16 = vmul.f32 1.442695, %v260_v12  ;;  %v261_v18 = vsub.f32 0.0, %v257_v15  ;;  %v252_v46 = vsub.f32 %v244_v34, %v248_v35  ;;  %v223_v35 = vld [vmem:[%s612_s21 + $0x10] sm:$0xff] }
  0x1c   : > { %v270_v19 = vmul.f32 1.442695, %v263_v17  ;;  %v233_v48 = vadd.s32 16, %v231_v36  ;;  %v245_v50 = vmax.f32 %v620_v10, 0.0  ;;  %v234_v51 = vadd.s32 24, %v231_v36  ;;  %v334_v17 = vld [vmem:[#allocation2 + $0x10] sm:$0xff] }
  0x1d   : > { %534 = vpow2.f32 %v268_v14  ;;  %v266_v20 = vmul.f32 1.442695, %v261_v18  ;;  %v232_v52 = vadd.s32 8, %v231_v36  ;;  %v249_v55 = vmul.f32 %v226_v9, %v620_v10 }
  0x1e   : > { %536 = vpow2.f32 %v264_v16  ;;  %v255_v60 = vsub.f32 %v247_v43, %v251_v44  ;;  %v238_v1 = vadd.s32 %v235_v40, %v233_v48  ;;  %v236_v2 = vadd.s32 %v235_v40, %v231_v36  ;;  %v221_v36 = vld [vmem:[%s612_s21] sm:$0xff]  ;;  %v359_v43 = vld [vmem:[#allocation3 + $0x10] sm:$0xff] }
  0x1f   : > { %538 = vpow2.f32 %v270_v19  ;;  %v637_v5 = vadd.s32 %v235_v40, %v234_v51  ;;  %v639_v6 = vadd.s32 %v235_v40, %v232_v52  ;;  %v253_v10 = vsub.f32 %v245_v50, %v249_v55  ;;  %v360_v55 = vld [vmem:[#allocation3 + $0x18] sm:$0xff] }
  0x20   : > { %540 = vpow2.f32 %v266_v20  ;;  %vm242_vm7 = vcmp.lt.s32.totalorder %v238_v1, 64  ;;  %vm240_vm8 = vcmp.lt.s32.totalorder %v236_v2, 64  ;;  %v332_v20 = vld [vmem:[#allocation2] sm:$0xff] }
  0x21   : > { %vm243_vm9 = vcmp.lt.s32.totalorder %v637_v5, 64  ;;  %vm241_vm10 = vcmp.lt.s32.totalorder %v639_v6, 64 }
  0x2a   : > { %v535_v21 = vpop.eup %534 }
  0x2b   : > { %v537_v22 = vpop.eup %536  ;;  %v290_v23 = vadd.f32 1.0, %v535_v21  ;;  %v293_v30 = vmul.f32 -0.5, %v535_v21  ;;  %v296_v41 = vand.u32 2147483647, %v535_v21 }
  0x2c   : > { %v272_v24 = vadd.f32 1.0, %v537_v22  ;;  %v539_v25 = vpop.eup %538  ;;  %v275_v32 = vmul.f32 -0.5, %v537_v22  ;;  %v278_v47 = vand.u32 2147483647, %v537_v22 }
  0x2d   : > { %542 = vlog2.f32 %v290_v23  ;;  %v541_v26 = vpop.eup %540  ;;  %v299_v27 = vadd.f32 1.0, %v539_v25  ;;  %v302_v37 = vmul.f32 -0.5, %v539_v25  ;;  %v294_v38 = vadd.f32 1.0, %v293_v30  ;;  %v333_v30 = vld [vmem:[#allocation2 + $0x8] sm:$0xff] }
  0x2e   : > { %544 = vlog2.f32 %v272_v24  ;;  %v281_v28 = vadd.f32 1.0, %v541_v26  ;;  %v284_v39 = vmul.f32 -0.5, %v541_v26  ;;  %v276_v42 = vadd.f32 1.0, %v275_v32 }
  0x2f   : > { %546 = vlog2.f32 %v299_v27  ;;  %v303_v49 = vadd.f32 1.0, %v302_v37  ;;  %v295_v53 = vmul.f32 %v535_v21, %v294_v38  ;;  %v305_v54 = vand.u32 2147483647, %v539_v25  ;;  %v335_v27 = vld [vmem:[#allocation2 + $0x18] sm:$0xff] }
  0x30   : > { %548 = vlog2.f32 %v281_v28  ;;  %v285_v56 = vadd.f32 1.0, %v284_v39  ;;  %vm629_vm3 = vcmp.lt.f32.partialorder %v296_v41, 0.0004427343  ;;  %v277_v59 = vmul.f32 %v537_v22, %v276_v42  ;;  %v224_v41 = vld [vmem:[%s612_s21 + $0x18] sm:$0xff]  ;;  %v222_v42 = vld [vmem:[%s612_s21 + $0x8] sm:$0xff] }
  0x31   : > { %v287_v61 = vand.u32 2147483647, %v541_v26  ;;  %vm633_vm4 = vcmp.lt.f32.partialorder %v278_v47, 0.0004427343  ;;  %v304_v4 = vmul.f32 %v539_v25, %v303_v49  ;;  %vm643_vm5 = vcmp.lt.f32.partialorder %v305_v54, 0.0004427343 }
  0x32   : > { %v286_v11 = vmul.f32 %v541_v26, %v285_v56 }
  0x33   : > { %vm649_vm6 = vcmp.lt.f32.partialorder %v287_v61, 0.0004427343 }
  0x3a   : > { %v543_v57 = vpop.eup %542 }
  0x3b   : > { %v545_v62 = vpop.eup %544  ;;  %v292_v63 = vmul.f32 0.6931472, %v543_v57  ;;  %v358_v57 = vld [vmem:[#allocation3 + $0x8] sm:$0xff] }
  0x3c   : > { %v274_v3 = vmul.f32 0.6931472, %v545_v62  ;;  %v547_v7 = vpop.eup %546 }
  0x3d   : > { %v298_v8 = vsel %vm629_vm3, %v295_v53, %v292_v63  ;;  %v549_v12 = vpop.eup %548  ;;  %v301_v15 = vmul.f32 0.6931472, %v547_v7 }
  0x3e   : > { %v310_v13 = vadd.f32 %v298_v8, %v254_v45  ;;  %v280_v14 = vsel %vm633_vm4, %v277_v59, %v274_v3  ;;  %v283_v19 = vmul.f32 0.6931472, %v549_v12  ;;  %v357_v45 = vld [vmem:[#allocation3] sm:$0xff] }
  0x3f   : > { %v308_v18 = vadd.f32 %v280_v14, %v252_v46  ;;  %v307_v21 = vsel %vm643_vm5, %v304_v4, %v301_v15 }
  0x40   : > { %v346_v22 = vsel %vm242_vm7, %v310_v13, 0.0  ;;  %v311_v23 = vadd.f32 %v307_v21, %v255_v60  ;;  %v289_v24 = vsel %vm649_vm6, %v286_v11, %v283_v19 }
  0x41   : > { %v350_v25 = vadd.f32 %v346_v22, %v334_v17  ;;  %v344_v26 = vsel %vm240_vm8, %v308_v18, 0.0  ;;  %v309_v28 = vadd.f32 %v289_v24, %v253_v10 }
  0x42   : > { %v348_v29 = vadd.f32 %v344_v26, %v332_v20  ;;  %v347_v31 = vsel %vm243_vm9, %v311_v23, 0.0 }
  0x43   : > { %355 = vst.msk [vmem:[#allocation2 + $0x10] sm:$0xff] %vm352_vm2, %v350_v25  ;;  %v351_v32 = vadd.f32 %v347_v31, %v335_v27  ;;  %v345_v33 = vsel %vm241_vm10, %v309_v28, 0.0 }
  0x44   : > { %353 = vst.msk [vmem:[#allocation2] sm:$0xff] %vm352_vm2, %v348_v29  ;;  %v349_v34 = vadd.f32 %v345_v33, %v333_v30 }
  0x45   : > { %356 = vst.msk [vmem:[#allocation2 + $0x18] sm:$0xff] %vm352_vm2, %v351_v32 }
  0x46   : > { %354 = vst.msk [vmem:[#allocation2 + $0x8] sm:$0xff] %vm352_vm2, %v349_v34 }
  0x88   : > { %v321_v37 = vpop.permute.xlu1 %320  ;;  %v317_v38 = vpop.permute.xlu0 %316 }
  0x89   : > { %v330_v39 = vsub.f32 %v223_v35, %v321_v37  ;;  %v328_v40 = vsub.f32 %v221_v36, %v317_v38 }
  0x8b   : > { %v363_v44 = vmul.f32 %v330_v39, %v330_v39  ;;  %v361_v46 = vmul.f32 %v328_v40, %v328_v40 }
  0x8c   : > { %v323_v47 = vpop.permute.xlu1 %322  ;;  %v319_v48 = vpop.permute.xlu0 %318 }
  0x8d   : > { %v367_v49 = vsel %vm242_vm7, %v363_v44, 0.0  ;;  %v365_v50 = vsel %vm240_vm8, %v361_v46, 0.0  ;;  %v331_v51 = vsub.f32 %v224_v41, %v323_v47  ;;  %v329_v52 = vsub.f32 %v222_v42, %v319_v48 }
  0x8e   : > { %v371_v53 = vadd.f32 %v367_v49, %v359_v43  ;;  %v369_v54 = vadd.f32 %v365_v50, %v357_v45 }
  0x8f   : > { %v364_v56 = vmul.f32 %v331_v51, %v331_v51  ;;  %v362_v58 = vmul.f32 %v329_v52, %v329_v52 }
  0x90   : > { %376 = vst.msk [vmem:[#allocation3 + $0x10] sm:$0xff] %vm373_vm11, %v371_v53  ;;  %374 = vst.msk [vmem:[#allocation3] sm:$0xff] %vm373_vm11, %v369_v54  ;;  %381 = sbr.rel (%p508_p5) target bundleno = 368 (0x170), region = 40 }
  0x91   : > { %v368_v59 = vsel %vm243_vm9, %v364_v56, 0.0  ;;  %v366_v60 = vsel %vm241_vm10, %v362_v58, 0.0 }
  0x92   : > { %v372_v61 = vadd.f32 %v368_v59, %v360_v55  ;;  %v370_v62 = vadd.f32 %v366_v60, %v358_v57 }
  0x94   : > { %377 = vst.msk [vmem:[#allocation3 + $0x18] sm:$0xff] %vm373_vm11, %v372_v61  ;;  %375 = vst.msk [vmem:[#allocation3 + $0x8] sm:$0xff] %vm373_vm11, %v370_v62 }
  0x95   : > { %v382_v63 = vld [vmem:[#allocation2] sm:$0xff]  ;;  %v383_v0 = vld [vmem:[#allocation2 + $0x8] sm:$0xff]  ;;  %v384_v1 = vld [vmem:[#allocation2 + $0x10] sm:$0xff] }
  0x96   : > { %v385_v2 = vld [vmem:[#allocation2 + $0x18] sm:$0xff]  ;;  %v386_v3 = vsel %vm352_vm2, %v382_v63, 0.0  ;;  %v387_v4 = vsel %vm352_vm2, %v383_v0, 0.0  ;;  %v389_v5 = vsel %vm352_vm2, %v384_v1, 0.0 }
  0x97   : > { %v403_v6 = vld [vmem:[#allocation3] sm:$0xff]  ;;  %v388_v8 = vadd.f32 %v387_v4, %v386_v3  ;;  %v405_v9 = vld [vmem:[#allocation3 + $0x10] sm:$0xff]  ;;  %v391_v13 = vsel %vm352_vm2, %v385_v2, 0.0 }
  0x98   : > { %v407_v11 = vsel %vm373_vm11, %v403_v6, 0.0  ;;  %v410_v15 = vsel %vm373_vm11, %v405_v9, 0.0 }
  0x99   : > { %v390_v16 = vadd.f32 %v389_v5, %v388_v8 }
  0x9b   : > { %v404_v7 = vld [vmem:[#allocation3 + $0x8] sm:$0xff]  ;;  %v406_v10 = vld [vmem:[#allocation3 + $0x18] sm:$0xff]  ;;  %v392_v19 = vadd.f32 %v391_v13, %v390_v16 }
  0x9c   : > { %v408_v12 = vsel %vm373_vm11, %v404_v7, 0.0  ;;  %v412_v18 = vsel %vm373_vm11, %v406_v10, 0.0 }
  0x9d   : > { %v409_v14 = vadd.f32 %v408_v12, %v407_v11  ;;  %393 = vadd.xlane.f32.xlu0 %v392_v19 }
  0x9f   : > { %v411_v17 = vadd.f32 %v410_v15, %v409_v14 }
  0xa1   : > { %v413_v20 = vadd.f32 %v412_v18, %v411_v17 }
  0xa3   : > { %414 = vadd.xlane.f32.xlu0 %v413_v20 }
 0x126   : > { %v394_v21 = vpop.xlane.xlu0 %393 }
 0x127   : > { %v395_v22 = vrot.slane %v394_v21, 4 }
 0x129   : > { %v396_v23 = vadd.f32 %v395_v22, %v394_v21 }
 0x12b   : > { %v397_v25 = vrot.slane %v396_v23, 2 }
 0x12c   : > { %v415_v24 = vpop.xlane.xlu0 %414 }
 0x12d   : > { %v416_v26 = vrot.slane %v415_v24, 4  ;;  %v398_v28 = vadd.f32 %v397_v25, %v396_v23 }
 0x12f   : > { %v417_v27 = vadd.f32 %v416_v26, %v415_v24  ;;  %v399_v30 = vrot.slane %v398_v28, 1 }
 0x131   : > { %v418_v29 = vrot.slane %v417_v27, 2  ;;  %v400_v32 = vadd.f32 %v399_v30, %v398_v28 }
 0x133   : > { %v419_v31 = vadd.f32 %v418_v29, %v417_v27  ;;  %513 = vpush %v400_v32 }
 0x135   : > { %v420_v33 = vrot.slane %v419_v31, 1 }
 0x137   : > { %v421_v34 = vadd.f32 %v420_v33, %v419_v31 }
 0x139   : > { %515 = vpush %v421_v34 }
 0x164   : > { %s514_s27 = spop %513 }
 0x165   : > { %s402_s28 = smul.f32 0.0009765625, %s514_s27 }
 0x16a   : > { %s516_s29 = spop %515 }
 0x16b   : > { %s423_s30 = smul.f32 0.00048828125, %s516_s29 }
 0x16d   : > { %s424_s4 = sadd.f32 %s423_s30, %s402_s28 }
 0x16f   : > { %426 = sst [smem:[#allocation4]] %s424_s4 }
 0x170 PF: > { %p521_p6 = scmp.eq.s32.totalorder %s601_s13, 1  ;;  %s574_s5 = smov [#allocation4]  }
 0x172   : > { %518 = dma.smem_to_hbm (%p521_p6), %s574_s5, 16, %s702_s3, [#allocation5]  }
 0x173   : > { %565 = dma.done.wait (%p521_p6), [#allocation5], 16  }
 0x174   : > { %567 = vsyncadd (%p521_p6), [#allocation5], 4294967280 }
 0x175   : > { %440 = sfence }
 0x176 PF: > { %s14_s12 = sadd.s32 1, %s570_s12  }
 0x177   : > { %p11_p7 = scmp.ge.s32.totalorder %s14_s12, 4  }
 0x179   :  { %13 = sbr.rel (!%p11_p7) target bundleno = 1 (0x1), region = 74 }
 0x17e   :  { %446 = vsyncpa [#allocation5], 1 }
 0x17f   :  { %448 = vsyncpa [#allocation5 + $0x1], 1 }

</bundles_post_ra>
